<compile_context>
chip_gen: v6e
topology: v6e:2x2x1
jax: 0.10.0
libtpu: 0.0.40
codegen_flags: <defaults>
</compile_context>

<pallas_src>
import jax
import jax.numpy as jnp
from jax import lax
from jax.experimental import pallas as pl
from jax.experimental.pallas import tpu as pltpu


def _conv_pool_kernel(p_ref, wc_ref, bc_ref, h_ref):
    """Fused conv3x3 + 2x2 maxpool + bias + relu for one batch tile.

    p_ref : (1, 96, n2) bf16 footprint patches; row = g*48 + fy*12 + fx*3 + ci,
            lane = th*256 + h'*16 + w'   (g = batch half, th = image within half).
    wc_ref: (128, 96) bf16 packed/masked conv weight (2 batch halves x 4 pool positions).
    bc_ref: (16, 1) f32 conv bias.
    h_ref : (1, 16, 2*n2) bf16 pooled features, lane = t*256 + h'*16 + w'.
    """
    n2 = p_ref.shape[2]
    conv = jnp.dot(wc_ref[...], p_ref[0], preferred_element_type=jnp.float32)  # (128, n2)
    for g in range(2):                       # two batch halves packed on the M axis
        c = conv[g * 64:(g + 1) * 64]        # (64, n2): 4 pool positions x 16 channels
        pooled = jnp.maximum(jnp.maximum(c[0:16], c[16:32]),
                             jnp.maximum(c[32:48], c[48:64]))
        # maxpool(relu(conv + b)) == relu(maxpool(conv) + b): per-channel bias, monotone ops.
        h = jnp.maximum(pooled + bc_ref[...], 0.0)
        h_ref[0, :, g * n2:(g + 1) * n2] = h.astype(h_ref.dtype)


def _fc_kernel(h_ref, wf_ref, bf_ref, out_ref):
    # h_ref : (1, 16, tb, 256) bf16 ; wf_ref: (16, 256, 128) bf16 ; bf_ref: (1, 128) f32
    acc = jnp.dot(h_ref[0, 0], wf_ref[0], preferred_element_type=jnp.float32)
    for c in range(1, 16):
        acc = acc + jnp.dot(h_ref[0, c], wf_ref[c], preferred_element_type=jnp.float32)
    out_ref[...] = acc + bf_ref[...]


def _round_up(a, m):
    return (a + m - 1) // m * m


def _const_block_spec(shape):
    """Constant-index weight/bias block; single-buffered when the API allows it."""
    idx = lambda i: (0,) * len(shape)
    try:
        return pl.BlockSpec(shape, idx, pipeline_mode=pl.Buffered(1))
    except Exception:                        # older jax without pipeline_mode support
        return pl.BlockSpec(shape, idx)


def simple_cnn_forward(x, w_conv, b_conv, w_fc, b_fc, tb=64):
    """x: (B, 3, 32, 32) NCHW (PyTorch convention).  Returns (B, 10) f32 logits."""
    B = x.shape[0]
    # Batch tile: aim for >= 4 grid steps (2 per v7x TensorCore) while keeping the
    # per-step working set small (f32 dot temp = 128 * tb*128 * 4 bytes = 4 MiB @ tb=64).
    # TODO(synk): on v5e/v6e (128 MiB VMEM) tb can be raised to 128 once chip detection
    # is plumbed through; kept <= 64 so the same config fits v7x's 64 MiB VMEM.
    tb = _round_up(max(8, min(tb, 64, _round_up(-(-B // 4), 8))), 8)
    b_pad = _round_up(B, tb)
    nb = b_pad // tb
    n2 = (tb // 2) * 256                                   # conv-dot lanes per batch half

    # ---- layout prep (pure indexing / casts, no FLOPs; stays in XLA) ----
    # Each pooled output pixel reads a 4x4x3 input footprint; each of the 4 pool
    # positions uses a masked 3x3 sub-window of it, so K=48 footprint taps replace
    # 4x27 duplicated conv taps.
    # TODO(synk): build taps in VMEM from compact (tb,34,34,3) blocks and fuse the FC
    # to drop the h round trip; both need an in-kernel stride-2 relayout.
    xb = jnp.pad(x, ((0, b_pad - B), (0, 0), (0, 0), (0, 0)))
    x_nhwc = jnp.transpose(xb, (0, 2, 3, 1)).astype(jnp.bfloat16)        # (Bp,32,32,3)
    xp = jnp.pad(x_nhwc, ((0, 0), (1, 1), (1, 1), (0, 0)))               # (Bp,34,34,3)
    xr = xp.reshape(b_pad, 17, 2, 17, 2, 3)                              # xp[b,2a+u,2c+v,ci]
    wins = jnp.stack(
        [jnp.stack([xr[:, fy1:fy1 + 16, :, fx1:fx1 + 16, :, :] for fx1 in range(2)],
                   axis=1) for fy1 in range(2)],
        axis=1)                                     # (Bp, fy1, fx1, h', fy0, w', fx0, ci)
    pt = jnp.transpose(wins, (1, 4, 2, 6, 7, 0, 3, 5))    # (fy1,fy0,fx1,fx0,ci, b, h', w')
    pt = pt.reshape(48, b_pad, 256).reshape(48, nb, 2, tb // 2, 256)
    patches = jnp.transpose(pt, (1, 2, 0, 3, 4)).reshape(nb, 96, n2)

    # Packed conv weight: row = g*64 + pos*16 + co, col = g*48 + fy*12 + fx*3 + ci,
    # masked to each pool position's 3x3 sub-window of the 4x4 footprint.
    w48 = jnp.zeros((64, 48), jnp.float32)
    for py in range(2):
        for px in range(2):
            pos = py * 2 + px
            for dy in range(3):
                for dx in range(3):
                    col = (dy + py) * 12 + (dx + px) * 3
                    w48 = w48.at[pos * 16:(pos + 1) * 16, col:col + 3].set(
                        w_conv[:, :, dy, dx])
    w96 = jnp.zeros((128, 96), jnp.float32)
    w96 = w96.at[0:64, 0:48].set(w48).at[64:128, 48:96].set(w48).astype(jnp.bfloat16)
    # TODO(synk): on 256-wide MXUs (v6e/v7x) a 16-group (256,192) packing halves column
    # pushes again; needs chip detection (it would double pushes on v5e).
    bc = b_conv.reshape(16, 1).astype(jnp.float32)

    wf = jnp.transpose(w_fc.reshape(10, 16, 256), (1, 2, 0))             # (c, s, 10)
    wf = jnp.pad(wf, ((0, 0), (0, 0), (0, 118))).astype(jnp.bfloat16)    # (16, 256, 128)
    bf = jnp.pad(b_fc, (0, 118)).reshape(1, 128).astype(jnp.float32)

    cparams = pltpu.CompilerParams(dimension_semantics=("parallel",),
                                   vmem_limit_bytes=32 * 1024 * 1024)

    # ---- kernel 1: conv + maxpool + bias + relu (tb images per grid step) ----
    conv_cost = pl.CostEstimate(
        flops=2 * 128 * 96 * nb * n2, transcendentals=0,
        bytes_accessed=(nb * 96 * n2 + 128 * 96 + b_pad * 16 * 256) * 2 + 16 * 4)
    h = pl.pallas_call(
        _conv_pool_kernel,
        out_shape=jax.ShapeDtypeStruct((nb, 16, tb * 256), jnp.bfloat16),
        grid_spec=pltpu.PrefetchScalarGridSpec(
            num_scalar_prefetch=0,
            grid=(nb,),
            in_specs=[
                pl.BlockSpec((1, 96, n2), lambda i: (i, 0, 0)),
                _const_block_spec((128, 96)),
                _const_block_spec((16, 1)),
            ],
            out_specs=pl.BlockSpec((1, 16, tb * 256), lambda i: (i, 0, 0))),
        compiler_params=cparams,
        cost_estimate=conv_cost,
    )(patches, w96, bc)

    # Free HBM metadata reshape: the FC kernel's DMA then delivers per-channel (tb, 256)
    # tiles directly, so the channel-major -> image-major flip costs no in-kernel retiling.
    h = h.reshape(nb, 16, tb, 256)

    # ---- kernel 2: fully connected layer (output padded 10 -> 128 lanes) ----
    fc_cost = pl.CostEstimate(
        flops=2 * b_pad * 4096 * 128, transcendentals=0,
        bytes_accessed=(b_pad * 4096 + 16 * 256 * 128) * 2 + (128 + b_pad * 128) * 4)
    out = pl.pallas_call(
        _fc_kernel,
        out_shape=jax.ShapeDtypeStruct((b_pad, 128), jnp.float32),
        grid_spec=pltpu.PrefetchScalarGridSpec(
            num_scalar_prefetch=0,
            grid=(nb,),
            in_specs=[
                pl.BlockSpec((1, 16, tb, 256), lambda i: (i, 0, 0, 0)),
                _const_block_spec((16, 256, 128)),
                _const_block_spec((1, 128)),
            ],
            out_specs=pl.BlockSpec((tb, 128), lambda i: (i, 0))),
        compiler_params=cparams,
        cost_estimate=fc_cost,
    )(h, wf, bf)

    return out[:B, :10]


if __name__ == "__main__":
    key = jax.random.PRNGKey(0)
    kx, k1, k2, k3, k4 = jax.random.split(key, 5)
    B = 12
    # Input spatial size must be 32x32 so the flatten feeds fc1(16*16*16 -> 10), as in the module.
    x = jax.random.normal(kx, (B, 3, 32, 32), dtype=jnp.float32)
    w_conv = 0.2 * jax.random.normal(k1, (16, 3, 3, 3), dtype=jnp.float32)        # OIHW
    b_conv = 0.1 * jax.random.normal(k2, (16,), dtype=jnp.float32)
    w_fc = 0.02 * jax.random.normal(k3, (10, 16 * 16 * 16), dtype=jnp.float32)    # (out, C*H*W)
    b_fc = 0.1 * jax.random.normal(k4, (10,), dtype=jnp.float32)

    out = simple_cnn_forward(x, w_conv, b_conv, w_fc, b_fc)
    out = jax.block_until_ready(out)

    # Pure-JAX f32 reference mirroring the PyTorch forward exactly (NCHW, CHW flatten).
    conv = lax.conv_general_dilated(x, w_conv, window_strides=(1, 1),
                                    padding=((1, 1), (1, 1)),
                                    dimension_numbers=("NCHW", "OIHW", "NCHW"))
    conv = conv + b_conv[None, :, None, None]
    relu = jnp.maximum(conv, 0.0)
    pooled = relu.reshape(B, 16, 16, 2, 16, 2).max(axis=(3, 5))
    ref = pooled.reshape(B, 16 * 16 * 16) @ w_fc.T + b_fc

    assert out.shape == (B, 10)
    err = float(jnp.max(jnp.abs(out - ref)))
    assert jnp.allclose(out, ref, atol=3e-2, rtol=3e-2), err
    print("KERNEL_OK")
</pallas_src>

<mosaic_0001>
module attributes {stable_mosaic.version = 11 : i64} {
  func.func @_conv_pool_kernel(%arg0: i32, %arg1: memref<1x96x1024xbf16, #tpu.memory_space<vmem>>, %arg2: memref<128x96xbf16, #tpu.memory_space<vmem>>, %arg3: memref<16x1xf32, #tpu.memory_space<vmem>>, %arg4: memref<1x16x2048xbf16, #tpu.memory_space<vmem>>) attributes {dimension_semantics = [#tpu.dimension_semantics<parallel>], iteration_bounds = array<i64: 2>, scalar_prefetch = 0 : i64, scratch_operands = 0 : i64, tpu.core_type = #tpu.core_type<tc>, window_params = [{transform_indices = @transform_0, window_bounds = array<i64: 1, 96, 1024>}, {pipeline_mode = #tpu.pipeline_mode<synchronous>, transform_indices = @transform_1, window_bounds = array<i64: 128, 96>}, {pipeline_mode = #tpu.pipeline_mode<synchronous>, transform_indices = @transform_2, window_bounds = array<i64: 16, 1>}, {transform_indices = @transform_3, window_bounds = array<i64: 1, 16, 2048>}]} {
    %c0 = arith.constant 0 : index
    %c0_0 = arith.constant 0 : index
    %0 = vector.load %arg2[%c0, %c0_0] : memref<128x96xbf16, #tpu.memory_space<vmem>>, vector<128x96xbf16>
    %c0_1 = arith.constant 0 : index
    %c0_2 = arith.constant 0 : index
    %c0_3 = arith.constant 0 : index
    %1 = vector.load %arg1[%c0_1, %c0_2, %c0_3] : memref<1x96x1024xbf16, #tpu.memory_space<vmem>>, vector<1x96x1024xbf16>
    %2 = vector.shape_cast %1 : vector<1x96x1024xbf16> to vector<96x1024xbf16>
    %cst = arith.constant dense<0.000000e+00> : vector<128x1024xf32>
    %3 = tpu.matmul %0, %2, %cst {dimension_numbers = #tpu.dot_dimension_numbers<[1], [0], [0], [1], [0, 0, 1, 1], [], []>} : vector<128x96xbf16>, vector<96x1024xbf16>, vector<128x1024xf32> -> vector<128x1024xf32>
    %4 = vector.extract_strided_slice %3 {offsets = [0, 0], sizes = [64, 1024], strides = [1, 1]} : vector<128x1024xf32> to vector<64x1024xf32>
    %5 = vector.extract_strided_slice %4 {offsets = [0, 0], sizes = [16, 1024], strides = [1, 1]} : vector<64x1024xf32> to vector<16x1024xf32>
    %6 = vector.extract_strided_slice %4 {offsets = [16, 0], sizes = [16, 1024], strides = [1, 1]} : vector<64x1024xf32> to vector<16x1024xf32>
    %7 = arith.maximumf %5, %6 : vector<16x1024xf32>
    %8 = vector.extract_strided_slice %4 {offsets = [32, 0], sizes = [16, 1024], strides = [1, 1]} : vector<64x1024xf32> to vector<16x1024xf32>
    %9 = vector.extract_strided_slice %4 {offsets = [48, 0], sizes = [16, 1024], strides = [1, 1]} : vector<64x1024xf32> to vector<16x1024xf32>
    %10 = arith.maximumf %8, %9 : vector<16x1024xf32>
    %11 = arith.maximumf %7, %10 : vector<16x1024xf32>
    %c0_4 = arith.constant 0 : index
    %c0_5 = arith.constant 0 : index
    %12 = vector.load %arg3[%c0_4, %c0_5] : memref<16x1xf32, #tpu.memory_space<vmem>>, vector<16x1xf32>
    %13 = vector.broadcast %12 : vector<16x1xf32> to vector<16x1024xf32>
    %14 = arith.addf %11, %13 : vector<16x1024xf32>
    %cst_6 = arith.constant 0.000000e+00 : f32
    %15 = vector.broadcast %cst_6 : f32 to vector<16x1024xf32>
    %16 = arith.maximumf %14, %15 : vector<16x1024xf32>
    %17 = arith.truncf %16 : vector<16x1024xf32> to vector<16x1024xbf16>
    %c0_7 = arith.constant 0 : index
    %c0_8 = arith.constant 0 : index
    %c0_9 = arith.constant 0 : index
    %18 = vector.load %arg4[%c0_7, %c0_8, %c0_9] : memref<1x16x2048xbf16, #tpu.memory_space<vmem>>, vector<1x16x1024xbf16>
    %19 = vector.shape_cast %18 : vector<1x16x1024xbf16> to vector<16x1024xbf16>
    %20 = vector.shape_cast %17 : vector<16x1024xbf16> to vector<1x16x1024xbf16>
    tpu.vector_store %arg4[%c0_7, %c0_8, %c0_9], %20 {strides = array<i32>} : memref<1x16x2048xbf16, #tpu.memory_space<vmem>>, vector<1x16x1024xbf16>,
    %21 = vector.extract_strided_slice %3 {offsets = [64, 0], sizes = [64, 1024], strides = [1, 1]} : vector<128x1024xf32> to vector<64x1024xf32>
    %22 = vector.extract_strided_slice %21 {offsets = [0, 0], sizes = [16, 1024], strides = [1, 1]} : vector<64x1024xf32> to vector<16x1024xf32>
    %23 = vector.extract_strided_slice %21 {offsets = [16, 0], sizes = [16, 1024], strides = [1, 1]} : vector<64x1024xf32> to vector<16x1024xf32>
    %24 = arith.maximumf %22, %23 : vector<16x1024xf32>
    %25 = vector.extract_strided_slice %21 {offsets = [32, 0], sizes = [16, 1024], strides = [1, 1]} : vector<64x1024xf32> to vector<16x1024xf32>
    %26 = vector.extract_strided_slice %21 {offsets = [48, 0], sizes = [16, 1024], strides = [1, 1]} : vector<64x1024xf32> to vector<16x1024xf32>
    %27 = arith.maximumf %25, %26 : vector<16x1024xf32>
    %28 = arith.maximumf %24, %27 : vector<16x1024xf32>
    %c0_10 = arith.constant 0 : index
    %c0_11 = arith.constant 0 : index
    %29 = vector.load %arg3[%c0_10, %c0_11] : memref<16x1xf32, #tpu.memory_space<vmem>>, vector<16x1xf32>
    %30 = vector.broadcast %29 : vector<16x1xf32> to vector<16x1024xf32>
    %31 = arith.addf %28, %30 : vector<16x1024xf32>
    %cst_12 = arith.constant 0.000000e+00 : f32
    %32 = vector.broadcast %cst_12 : f32 to vector<16x1024xf32>
    %33 = arith.maximumf %31, %32 : vector<16x1024xf32>
    %34 = arith.truncf %33 : vector<16x1024xf32> to vector<16x1024xbf16>
    %c0_13 = arith.constant 0 : index
    %c0_14 = arith.constant 0 : index
    %c1024 = arith.constant 1024 : index
    %35 = vector.load %arg4[%c0_13, %c0_14, %c1024] : memref<1x16x2048xbf16, #tpu.memory_space<vmem>>, vector<1x16x1024xbf16>
    %36 = vector.shape_cast %35 : vector<1x16x1024xbf16> to vector<16x1024xbf16>
    %37 = vector.shape_cast %34 : vector<16x1024xbf16> to vector<1x16x1024xbf16>
    tpu.vector_store %arg4[%c0_13, %c0_14, %c1024], %37 {strides = array<i32>} : memref<1x16x2048xbf16, #tpu.memory_space<vmem>>, vector<1x16x1024xbf16>,
    return
  }
  func.func @transform_0(%arg0: i32) -> (i32, i32, i32) {
    %c0_i32 = arith.constant 0 : i32
    %c0_i32_0 = arith.constant 0 : i32
    %c0_i32_1 = arith.constant 0 : i32
    return %arg0, %c0_i32, %c0_i32_0 : i32, i32, i32
  }
  func.func @transform_1(%arg0: i32) -> (i32, i32) {
    %c0_i32 = arith.constant 0 : i32
    %c0_i32_0 = arith.constant 0 : i32
    %c0_i32_1 = arith.constant 0 : i32
    return %c0_i32, %c0_i32_0 : i32, i32
  }
  func.func @transform_2(%arg0: i32) -> (i32, i32) {
    %c0_i32 = arith.constant 0 : i32
    %c0_i32_0 = arith.constant 0 : i32
    %c0_i32_1 = arith.constant 0 : i32
    return %c0_i32, %c0_i32_0 : i32, i32
  }
  func.func @transform_3(%arg0: i32) -> (i32, i32, i32) {
    %c0_i32 = arith.constant 0 : i32
    %c0_i32_0 = arith.constant 0 : i32
    %c0_i32_1 = arith.constant 0 : i32
    return %arg0, %c0_i32, %c0_i32_0 : i32, i32, i32
  }
}

</mosaic_0001>

<bundles_post_ra>
// kernel: tpu_custom_call.1
= control target key start
LH: loop header
LB: loop body
LE: loop exit
PB: predicated region body
PF: predicated region fallthrough
CT: control target
= control target key end

     0   :  { %8 = vsyncpa [#allocation3], 0  ;;  %s2086_s0 = inlined_call_operand.hbm [shape: bf16[2,96,1024], index: 0, kind: input, shape index: {}]   ;;  %s2087_s1 = inlined_call_operand.vmem [shape: bf16[128,96], index: 1, kind: input, shape index: {}]   ;;  %s2088_s2 = inlined_call_operand.vmem [shape: f32[16,1], index: 2, kind: input, shape index: {}]   ;;  %s2089_s3 = inlined_call_operand.hbm [shape: bf16[2,16,2048], index: 3, kind: output, shape index: {}]  }
   0x1   :  { %10 = vsyncpa [#allocation3 + $0x1], 0 }
   0x2   :  { %11 = vsyncpa [#allocation4], 0 }
   0x3   :  { %13 = vsyncpa [#allocation4 + $0x1], 0  ;;  %s1711_s12 = smov 0   ;;  %s1713_s13 = smov 0  }
   0x4   :  { %s1715_s14 = smov 0   ;;  %s1717_s15 = smov 0  }
   0x5 LB: > { %s1732_s16 = sadd.s32 4294967295, %s1682_s15   ;;  %s1394_s17 = sadd.s32 4294967294, %s1682_s15   ;;  %s1682_s15 = sphi %s1717_s15, %s2103_s15   ;;  %s1678_s14 = sphi %s1715_s14, %s2102_s14   ;;  %s1674_s13 = sphi %s1713_s13, %s2101_s13   ;;  %s1670_s12 = sphi %s1711_s12, %s2100_s12  }
   0x6   : > { %s1736_s18 = sadd.s32 1, %s1682_s15   ;;  %s26_s19 = sadd.s32 1, %s1678_s14 }
   0x7   : > { %s23_s20 = ssub.s32 %s1682_s15, %s1736_s18  ;;  %p33_p0 = scmp.ne.s32.totalorder %s1678_s14, %s1674_s13 }
   0x8   : > { %p24_p1 = scmp.eq.s32.totalorder %s23_s20, 0  ;;  %p34_p2 = scmp.eq.s32.totalorder %s1682_s15, 0 }
   0x9   : > { %p39_p3 = scmp.ne.s32.totalorder %s1674_s13, %s1670_s12  ;;  %p40_p4 = scmp.eq.s32.totalorder %s1732_s16, 0 }
   0xa   : > { %s1748_s21 = scalar_select %p24_p1, %s1678_s14, %s26_s19  }
   0xb   : > { %p35_p5 = por %p34_p2, %p33_p0  ;;  %p1750_p6 = por %p40_p4, %p39_p3 }
   0xc   : > { %p105_p7 = scmp.eq.s32.totalorder %s1732_s16, 1  ;;  %p111_p8 = scmp.eq.s32.totalorder %s1394_s17, 1 }
   0xd   : > { %s2092_s22 = scalar_select %p1750_p6, 1, 0 }
   0xe   : > { %p1541_p10 = scmp.lt.s32.totalorder %s1682_s15, 2  ;;  %p1757_p11 = por %p105_p7, %p33_p0 }
   0xf   : > { %p1761_p12 = por %p111_p8, %p39_p3  ;;  %s137_s25 = sand.u32 1, %s1678_s14  }
  0x10   : > { %s2093_s23 = scalar_select %p1757_p11, 1, 0 }
  0x11   : > { %s2094_s24 = scalar_select %p1761_p12, 1, 0 }
  0x12   : > { %s1527_s26 = smul.u32 6144, %s1682_s15  ;;  %p1772_p13 = pnand %p1541_p10, %p35_p5 }
  0x13   : > { %s1526_s27 = smul.u32 384, %s137_s25  ;;  %s1778_s7 = scalar_lea.sflag [#allocation3], %s137_s25 }
  0x14   : > { %s1770_s30 = scalar_lea.hbm %s2086_s0, %s1527_s26  ;;  %p1592_p1 = pneg %p1772_p13 }
  0x15   : > { %s141_s5 = scalar_lea.vmem [#allocation2], %s1526_s27  ;;  %s1590_s8 = scalar_lea.hbm %s1770_s30, 6144 }
  0x16   : > { %s148_s6 = sshll.u32 %s141_s5, 4  ;;  %p1591_p0 = scmp.ne.s32.totalorder %s1770_s30, %s1590_s8  ;;  %s1776_s6 = int_to_ptr.vmem [resolvable:$true] %s148_s6 }
  0x17   : > { %s1595_s11 = scalar_lea.hbm %s2086_s0, 12288  ;;  %p1596_p4 = scmp.lt.s32.totalorder %s1770_s30, %s2086_s0 }
  0x18   : > { %p1593_p2 = pnand %p1592_p1, %p1591_p0  ;;  %p1597_p5 = scmp.lt.s32.totalorder %s1595_s11, %s1590_s8 }
  0x1a   : > { %p1594_p3 = pneg %p1593_p2  ;;  %p1598_p7 = por %p1597_p5, %p1596_p4 }
  0x1c   : > { %p1599_p8 = pnand %p1598_p7, %p1594_p3 }
  0x1e   : > { %1602 = shalt.err (!%p1599_p8)
}
  0x1f   : > { %s1603_s20 = scalar_lea.vmem %s1776_s6, 6144  ;;  %s1684_s25 = smov [#allocation2]  }
  0x20   : > { %p1604_p10 = scmp.ne.s32.totalorder %s1776_s6, %s1603_s20  ;;  %s1608_s26 = sshll.u32 %s1684_s25, 4  ;;  %s1609_s26 = int_to_ptr.vmem [resolvable:$false] %s1608_s26 }
  0x21   : > { %s1610_s27 = scalar_lea.vmem %s1609_s26, 12288  ;;  %p1611_p2 = scmp.lt.s32.totalorder %s1776_s6, %s1609_s26 }
  0x22   : > { %p1606_p9 = pnand %p1604_p10, %p1592_p1  ;;  %p1612_p12 = scmp.lt.s32.totalorder %s1610_s27, %s1603_s20 }
  0x24   : > { %p1607_p0 = pneg %p1606_p9  ;;  %p1613_p11 = por %p1612_p12, %p1611_p2 }
  0x26   : > { %p1614_p6 = pnand %p1613_p11, %p1607_p0 }
  0x28   : > { %1617 = shalt.err (!%p1614_p6)
}
  0x29   : > { %s1685_s28 = smov 512   ;;  %s1686_s29 = smov 32  }
  0x2a   : > { %1536 = dma.hbm_to_vmem [thread:$0]  (!%p1772_p13), %s1770_s30, 6144, %s1776_s6, %s1778_s7, %s1685_s28, %s1685_s28, %s1686_s29  }
  0x2b   : > { %p1398_p9 = scmp.ge.s32.totalorder %s1682_s15, 1  ;;  %p156_p1 = scmp.lt.s32.totalorder %s1682_s15, 3 }
  0x2d   : > { %p157_p3 = pnand %p1398_p9, %p156_p1 }
  0x2e   : > { %s1802_s5 = sand.u32 (!%p157_p3), 1, %s1674_s13   ;;  %p2096_p6 = scmp.ne.s32.totalorder (!%p157_p3), %s2092_s22, 0 }
  0x2f   : > { %160 = sbr.rel (%p157_p3) target bundleno = 424 (0x1a8), region = 32  ;;  %s163_s9 = scalar_lea.sflag (!%p157_p3), [#allocation3], %s1802_s5 }
  0x30   : > { %s1528_s8 = smul.u32 (!%p157_p3), 384, %s1802_s5 }
  0x32   : > { %s1806_s10 = scalar_lea.vmem (!%p157_p3), [#allocation2], %s1528_s8 }
  0x34   : > { %1661 = dma.done.wait (%p2096_p6), %s163_s9, 6144  }
  0x35   : > { %1663 = vsyncadd (%p2096_p6), %s163_s9, 4294961152  ;;  %v1687_v0 = vmov 0   ;;  %v246_v1 = vld [vmem:[%s1806_s10 + $0x140] sm:$0xff]  ;;  %v247_v3 = vld [vmem:[%s1806_s10 + $0x148] sm:$0xff]  ;;  %vm534_vm0 = vcmask 785408   ;;  %s1399_s6 = sshll.u32 %s1802_s5, 7 }
  0x36   : > { %591 = vmatprep.mubr.bf16.mxu0 %v1687_v0  ;;  %704 = vmatprep.mubr.bf16.mxu1 %v1687_v0  ;;  %v250_v2 = vld [vmem:[%s1806_s10 + $0x160] sm:$0xff]  ;;  %v251_v5 = vld [vmem:[%s1806_s10 + $0x168] sm:$0xff]  ;;  %v248_v46 = vld [vmem:[%s1806_s10 + $0x150] sm:$0xff]  ;;  %s1984_s7 = scalar_lea.vmem [#allocation5], %s1399_s6  ;;  %s1525_s11 = sshll.u32 %s1732_s16, 11 }
  0x37   : > { %1580 = vset.pattern.permute.xlu0 %v1687_v0  ;;  %1581 = vset.pattern.permute.xlu1 %v1687_v0  ;;  %v1449_v4 = vcombine.high %v246_v1, %v250_v2  ;;  %v1448_v6 = vcombine.low %v246_v1, %v250_v2  ;;  %v238_v7 = vld [vmem:[%s1806_s10 + $0x100] sm:$0xff]  ;;  %v1451_v9 = vcombine.high %v247_v3, %v251_v5  ;;  %v239_v12 = vld [vmem:[%s1806_s10 + $0x108] sm:$0xff]  ;;  %v252_v48 = vld [vmem:[%s1806_s10 + $0x170] sm:$0xff]  ;;  %s1321_s17 = sshll.u32 %s1984_s7, 4  ;;  %s2039_s25 = scalar_lea.hbm %s2089_s3, %s1525_s11  ;;  %s2041_s17 = int_to_ptr.vmem [resolvable:$true] %s1321_s17 }
  0x38   : > { %v242_v8 = vld [vmem:[%s1806_s10 + $0x120] sm:$0xff]  ;;  %v1450_v10 = vcombine.low %v247_v3, %v251_v5  ;;  %v243_v13 = vld [vmem:[%s1806_s10 + $0x128] sm:$0xff]  ;;  %v249_v49 = vld [vmem:[%s1806_s10 + $0x158] sm:$0xff]  ;;  %v1453_v53 = vcombine.high %v248_v46, %v252_v48  ;;  %v1452_v58 = vcombine.low %v248_v46, %v252_v48  ;;  %s1308_s16 = scalar_lea.sflag [#allocation4], %s1802_s5  ;;  %s1618_s26 = scalar_lea.vmem %s2041_s17, 2048 }
  0x39   : > { %v1441_v11 = vcombine.high %v238_v7, %v242_v8  ;;  %v230_v14 = vld [vmem:[%s1806_s10 + $0xc0] sm:$0xff]  ;;  %563 = vmatprep.subr.bf16.mxu0 %v1449_v4  ;;  %v1443_v15 = vcombine.high %v239_v12, %v243_v13  ;;  %v231_v17 = vld [vmem:[%s1806_s10 + $0xc8] sm:$0xff]  ;;  %676 = vmatprep.subr.bf16.mxu1 %v1451_v9  ;;  %v1440_v19 = vcombine.low %v238_v7, %v242_v8  ;;  %v253_v50 = vld [vmem:[%s1806_s10 + $0x178] sm:$0xff]  ;;  %p1619_p11 = scmp.ne.s32.totalorder %s2041_s17, %s1618_s26  ;;  %p2097_p12 = scmp.ne.s32.totalorder %s2093_s23, 0 }
  0x3a   : > { %v234_v16 = vld [vmem:[%s1806_s10 + $0xe0] sm:$0xff]  ;;  %v235_v18 = vld [vmem:[%s1806_s10 + $0xe8] sm:$0xff]  ;;  %564 = vmatpush1.bf16.msra.mxu0 %v1448_v6  ;;  %677 = vmatpush1.bf16.msra.mxu1 %v1450_v10  ;;  %v1442_v20 = vcombine.low %v239_v12, %v243_v13  ;;  %v1455_v55 = vcombine.high %v249_v49, %v253_v50  ;;  %v240_v56 = vld [vmem:[%s1806_s10 + $0x110] sm:$0xff]  ;;  %v1454_v62 = vcombine.low %v249_v49, %v253_v50  ;;  %s1688_s27 = smov [#allocation5]  }
  0x3b   : > { %565 = vmatprep.subr.bf16.mxu0 %v1441_v11  ;;  %v1433_v21 = vcombine.high %v230_v14, %v234_v16  ;;  %678 = vmatprep.subr.bf16.mxu1 %v1443_v15  ;;  %v1435_v22 = vcombine.high %v231_v17, %v235_v18  ;;  %v222_v23 = vld [vmem:[%s1806_s10 + $0x80] sm:$0xff]  ;;  %v223_v25 = vld [vmem:[%s1806_s10 + $0x88] sm:$0xff]  ;;  %v1432_v27 = vcombine.low %v230_v14, %v234_v16  ;;  %v244_v57 = vld [vmem:[%s1806_s10 + $0x130] sm:$0xff]  ;;  %p1620_p13 = pnand %p1619_p11, %p2097_p12  ;;  %s1622_s28 = sshll.u32 %s1688_s27, 4  ;;  %s1623_s28 = int_to_ptr.vmem [resolvable:$false] %s1622_s28 }
  0x3c   : > { %v226_v24 = vld [vmem:[%s1806_s10 + $0xa0] sm:$0xff]  ;;  %v227_v26 = vld [vmem:[%s1806_s10 + $0xa8] sm:$0xff]  ;;  %v1434_v28 = vcombine.low %v231_v17, %v235_v18  ;;  %v241_v59 = vld [vmem:[%s1806_s10 + $0x118] sm:$0xff]  ;;  %v1445_v63 = vcombine.high %v240_v56, %v244_v57  ;;  %v1444_v6 = vcombine.low %v240_v56, %v244_v57  ;;  %s1624_s29 = scalar_lea.vmem %s1623_s28, 4096  ;;  %p1625_p5 = scmp.lt.s32.totalorder %s2041_s17, %s1623_s28 }
  0x3d   : > { %v1425_v29 = vcombine.high %v222_v23, %v226_v24  ;;  %v214_v30 = vld [vmem:[%s1806_s10 + $0x40] sm:$0xff]  ;;  %v1427_v31 = vcombine.high %v223_v25, %v227_v26  ;;  %v215_v33 = vld [vmem:[%s1806_s10 + $0x48] sm:$0xff]  ;;  %v1424_v35 = vcombine.low %v222_v23, %v226_v24  ;;  %v1426_v36 = vcombine.low %v223_v25, %v227_v26  ;;  %v245_v60 = vld [vmem:[%s1806_s10 + $0x138] sm:$0xff]  ;;  %p1621_p4 = pneg %p1620_p13  ;;  %p1626_p7 = scmp.lt.s32.totalorder %s1624_s29, %s1618_s26 }
  0x3e   : > { %566 = vmatpush1.bf16.msra.mxu0 %v1440_v19  ;;  %679 = vmatpush1.bf16.msra.mxu1 %v1442_v20  ;;  %v218_v32 = vld [vmem:[%s1806_s10 + $0x60] sm:$0xff]  ;;  %v219_v34 = vld [vmem:[%s1806_s10 + $0x68] sm:$0xff]  ;;  %v232_v1 = vld [vmem:[%s1806_s10 + $0xd0] sm:$0xff]  ;;  %v1447_v3 = vcombine.high %v241_v59, %v245_v60  ;;  %v1446_v8 = vcombine.low %v241_v59, %v245_v60 }
  0x3f   : > { %567 = vmatprep.subr.bf16.mxu0 %v1433_v21  ;;  %680 = vmatprep.subr.bf16.mxu1 %v1435_v22  ;;  %v1417_v37 = vcombine.high %v214_v30, %v218_v32  ;;  %v1419_v38 = vcombine.high %v215_v33, %v219_v34  ;;  %v206_v39 = vld [vmem:[%s1806_s10] sm:$0xff]  ;;  %v207_v41 = vld [vmem:[%s1806_s10 + $0x8] sm:$0xff]  ;;  %v1416_v43 = vcombine.low %v214_v30, %v218_v32  ;;  %v236_v2 = vld [vmem:[%s1806_s10 + $0xf0] sm:$0xff]  ;;  %p1627_p8 = por %p1626_p7, %p1625_p5 }
  0x40   : > { %v210_v40 = vld [vmem:[%s1806_s10 + $0x20] sm:$0xff]  ;;  %v211_v42 = vld [vmem:[%s1806_s10 + $0x28] sm:$0xff]  ;;  %v1418_v44 = vcombine.low %v215_v33, %v219_v34  ;;  %v233_v4 = vld [vmem:[%s1806_s10 + $0xd8] sm:$0xff]  ;;  %v1437_v9 = vcombine.high %v232_v1, %v236_v2  ;;  %v1436_v16 = vcombine.low %v232_v1, %v236_v2 }
  0x41   : > { %v1409_v45 = vcombine.high %v206_v39, %v210_v40  ;;  %v1411_v47 = vcombine.high %v207_v41, %v211_v42  ;;  %v1408_v51 = vcombine.low %v206_v39, %v210_v40  ;;  %v1410_v52 = vcombine.low %v207_v41, %v211_v42  ;;  %v1847_v54 = vld [vmem:[%s2087_s1] sm:$0xff]   ;;  %v237_v5 = vld [vmem:[%s1806_s10 + $0xf8] sm:$0xff]  ;;  %v1060_v7 = vld [vmem:[%s2088_s2 + $0x8] sm:$0xff]  ;;  %p1628_p10 = pnand %p1627_p8, %p1621_p4 }
  0x42   : > { %568 = vmatpush1.bf16.msra.mxu0 %v1432_v27  ;;  %681 = vmatpush1.bf16.msra.mxu1 %v1434_v28  ;;  %v1059_v61 = vld [vmem:[%s2088_s2] sm:$0xff]  ;;  %v1439_v10 = vcombine.high %v233_v4, %v237_v5  ;;  %v1872_v11 = vld [vmem:[%s2087_s1 + $0x8] sm:$0xff]   ;;  %v224_v12 = vld [vmem:[%s1806_s10 + $0x90] sm:$0xff]  ;;  %v1438_v17 = vcombine.low %v233_v4, %v237_v5 }
  0x43   : > { %569 = vmatprep.subr.bf16.mxu0 %v1425_v29  ;;  %682 = vmatprep.subr.bf16.mxu1 %v1427_v31  ;;  %v228_v13 = vld [vmem:[%s1806_s10 + $0xb0] sm:$0xff]  ;;  %v225_v14 = vld [vmem:[%s1806_s10 + $0x98] sm:$0xff]  ;;  %v1586_v40 = vld [vmem:[%s2087_s1 + $0x20] sm:$0xff]  }
  0x44   : > { %1063 = vperm.xlu0 %1580, %v1059_v61   ;;  %1211 = vperm.xlu1 %1581, %v1059_v61   ;;  %v229_v15 = vld [vmem:[%s1806_s10 + $0xb8] sm:$0xff]  ;;  %v1429_v18 = vcombine.high %v224_v12, %v228_v13  ;;  %v216_v20 = vld [vmem:[%s1806_s10 + $0x50] sm:$0xff]  ;;  %v1428_v24 = vcombine.low %v224_v12, %v228_v13  ;;  %v1587_v41 = vld [vmem:[%s2087_s1 + $0x28] sm:$0xff]  }
  0x45   : > { %v1431_v19 = vcombine.high %v225_v14, %v229_v15  ;;  %v220_v21 = vld [vmem:[%s1806_s10 + $0x70] sm:$0xff]  ;;  %v217_v22 = vld [vmem:[%s1806_s10 + $0x58] sm:$0xff]  ;;  %v1430_v25 = vcombine.low %v225_v14, %v229_v15 }
  0x46   : > { %570 = vmatpush1.bf16.msra.mxu0 %v1424_v35  ;;  %683 = vmatpush1.bf16.msra.mxu1 %v1426_v36  ;;  %v221_v23 = vld [vmem:[%s1806_s10 + $0x78] sm:$0xff]  ;;  %v1421_v26 = vcombine.high %v216_v20, %v220_v21  ;;  %v1584_v27 = vld [vmem:[%s2087_s1 + $0x10] sm:$0xff]   ;;  %v1420_v33 = vcombine.low %v216_v20, %v220_v21 }
  0x47   : > { %571 = vmatprep.subr.bf16.mxu0 %v1417_v37  ;;  %684 = vmatprep.subr.bf16.mxu1 %v1419_v38  ;;  %v1423_v28 = vcombine.high %v217_v22, %v221_v23  ;;  %v208_v29 = vld [vmem:[%s1806_s10 + $0x10] sm:$0xff]  ;;  %v209_v31 = vld [vmem:[%s1806_s10 + $0x18] sm:$0xff]  ;;  %v1422_v34 = vcombine.low %v217_v22, %v221_v23 }
  0x48   : > { %1068 = vperm.xlu0 %1580, %v1060_v7   ;;  %1216 = vperm.xlu1 %1581, %v1060_v7   ;;  %v212_v30 = vld [vmem:[%s1806_s10 + $0x30] sm:$0xff]  ;;  %v213_v32 = vld [vmem:[%s1806_s10 + $0x38] sm:$0xff] }
  0x49   : > { %v1413_v35 = vcombine.high %v208_v29, %v212_v30  ;;  %v1415_v36 = vcombine.high %v209_v31, %v213_v32  ;;  %v1412_v37 = vcombine.low %v208_v29, %v212_v30  ;;  %v1414_v38 = vcombine.low %v209_v31, %v213_v32  ;;  %v1585_v39 = vld [vmem:[%s2087_s1 + $0x18] sm:$0xff]   ;;  %v1588_v42 = vld [vmem:[%s2087_s1 + $0x30] sm:$0xff]  }
  0x4a   : > { %572 = vmatpush1.bf16.msra.mxu0 %v1416_v43  ;;  %685 = vmatpush1.bf16.msra.mxu1 %v1418_v44  ;;  %v1589_v43 = vld [vmem:[%s2087_s1 + $0x38] sm:$0xff]  }
  0x4b   : > { %573 = vmatprep.subr.bf16.mxu0 %v1409_v45  ;;  %686 = vmatprep.subr.bf16.mxu1 %v1411_v47 }
  0x4e   : > { %574 = vmatpush1.bf16.msra.mxu0 %v1408_v51  ;;  %687 = vmatpush1.bf16.msra.mxu1 %v1410_v52 }
  0x4f   : > { %789 = vmatprep.subr.bf16.mxu0 %v1453_v53  ;;  %902 = vmatprep.subr.bf16.mxu1 %v1455_v55 }
  0x51   : > { %1456 = vmatmul.mubr.msk.bf16.vlgmr.msra.gmra.mxu0 %vm534_vm0, %v1847_v54  ;;  %1464 = vmatmul.mubr.msk.bf16.vlgmr.msra.gmra.mxu1 %vm534_vm0, %v1847_v54 }
  0x52   : > { %790 = vmatpush1.bf16.msra.mxu0 %v1452_v58  ;;  %903 = vmatpush1.bf16.msra.mxu1 %v1454_v62 }
  0x53   : > { %601 = vmatprep.mubr.bf16.mxu0 %v1687_v0  ;;  %714 = vmatprep.mubr.bf16.mxu1 %v1687_v0 }
  0x54   : > { %791 = vmatprep.subr.bf16.mxu0 %v1445_v63  ;;  %904 = vmatprep.subr.bf16.mxu1 %v1447_v3 }
  0x56   : > { %792 = vmatpush1.bf16.msra.mxu0 %v1444_v6  ;;  %905 = vmatpush1.bf16.msra.mxu1 %v1446_v8 }
  0x57   : > { %793 = vmatprep.subr.bf16.mxu0 %v1437_v9  ;;  %906 = vmatprep.subr.bf16.mxu1 %v1439_v10 }
  0x59   : > { %1457 = vmatmul.mubr.msk.bf16.gmra.mxu0 %vm534_vm0, %v1872_v11  ;;  %1465 = vmatmul.mubr.msk.bf16.gmra.mxu1 %vm534_vm0, %v1872_v11 }
  0x5a   : > { %611 = vmatprep.mubr.bf16.mxu0 %v1687_v0  ;;  %724 = vmatprep.mubr.bf16.mxu1 %v1687_v0 }
  0x5b   : > { %794 = vmatpush1.bf16.msra.mxu0 %v1436_v16  ;;  %907 = vmatpush1.bf16.msra.mxu1 %v1438_v17 }
  0x5c   : > { %795 = vmatprep.subr.bf16.mxu0 %v1429_v18  ;;  %908 = vmatprep.subr.bf16.mxu1 %v1431_v19 }
  0x5f   : > { %796 = vmatpush1.bf16.msra.mxu0 %v1428_v24  ;;  %909 = vmatpush1.bf16.msra.mxu1 %v1430_v25 }
  0x60   : > { %797 = vmatprep.subr.bf16.mxu0 %v1421_v26  ;;  %910 = vmatprep.subr.bf16.mxu1 %v1423_v28 }
  0x61   : > { %1458 = vmatmul.mubr.msk.bf16.gmra.mxu0 %vm534_vm0, %v1584_v27  ;;  %1466 = vmatmul.mubr.msk.bf16.gmra.mxu1 %vm534_vm0, %v1584_v27 }
  0x62   : > { %621 = vmatprep.mubr.bf16.mxu0 %v1687_v0  ;;  %734 = vmatprep.mubr.bf16.mxu1 %v1687_v0 }
  0x63   : > { %798 = vmatpush1.bf16.msra.mxu0 %v1420_v33  ;;  %911 = vmatpush1.bf16.msra.mxu1 %v1422_v34 }
  0x64   : > { %799 = vmatprep.subr.bf16.mxu0 %v1413_v35  ;;  %912 = vmatprep.subr.bf16.mxu1 %v1415_v36 }
  0x67   : > { %800 = vmatpush1.bf16.msra.mxu0 %v1412_v37  ;;  %913 = vmatpush1.bf16.msra.mxu1 %v1414_v38 }
  0x69   : > { %1459 = vmatmul.mubr.msk.bf16.gmra.mxu0 %vm534_vm0, %v1585_v39  ;;  %1467 = vmatmul.mubr.msk.bf16.gmra.mxu1 %vm534_vm0, %v1585_v39 }
  0x6a   : > { %631 = vmatprep.mubr.bf16.mxu0 %v1687_v0  ;;  %744 = vmatprep.mubr.bf16.mxu1 %v1687_v0 }
  0x71   : > { %1460 = vmatmul.mubr.msk.bf16.gmra.mxu0 %vm534_vm0, %v1586_v40  ;;  %1468 = vmatmul.mubr.msk.bf16.gmra.mxu1 %vm534_vm0, %v1586_v40 }
  0x72   : > { %641 = vmatprep.mubr.bf16.mxu0 %v1687_v0  ;;  %754 = vmatprep.mubr.bf16.mxu1 %v1687_v0 }
  0x79   : > { %1461 = vmatmul.mubr.msk.bf16.gmra.mxu0 %vm534_vm0, %v1587_v41  ;;  %1469 = vmatmul.mubr.msk.bf16.gmra.mxu1 %vm534_vm0, %v1587_v41 }
  0x7a   : > { %651 = vmatprep.mubr.bf16.mxu0 %v1687_v0  ;;  %764 = vmatprep.mubr.bf16.mxu1 %v1687_v0 }
  0x81   : > { %1462 = vmatmul.mubr.msk.bf16.gmra.mxu0 %vm534_vm0, %v1588_v42  ;;  %1470 = vmatmul.mubr.msk.bf16.gmra.mxu1 %vm534_vm0, %v1588_v42 }
  0x82   : > { %661 = vmatprep.mubr.bf16.mxu0 %v1687_v0  ;;  %774 = vmatprep.mubr.bf16.mxu1 %v1687_v0 }
  0x89   : > { %1463 = vmatmul.mubr.msk.bf16.gmra.mxu0 %vm534_vm0, %v1589_v43  ;;  %1471 = vmatmul.mubr.msk.bf16.gmra.mxu1 %vm534_vm0, %v1589_v43 }
  0x8a   : > { %817 = vmatprep.mubr.bf16.mxu0 %v1687_v0  ;;  %930 = vmatprep.mubr.bf16.mxu1 %v1687_v0 }
  0x91   : > { %1472 = vmatmul.mubr.msk.bf16.vlgmr.msra.gmra.mxu0 %vm534_vm0, %v1847_v54  ;;  %1480 = vmatmul.mubr.msk.bf16.vlgmr.msra.gmra.mxu1 %vm534_vm0, %v1847_v54 }
  0x92   : > { %827 = vmatprep.mubr.bf16.mxu0 %v1687_v0  ;;  %940 = vmatprep.mubr.bf16.mxu1 %v1687_v0 }
  0x99   : > { %1473 = vmatmul.mubr.msk.bf16.gmra.mxu0 %vm534_vm0, %v1872_v11  ;;  %1481 = vmatmul.mubr.msk.bf16.gmra.mxu1 %vm534_vm0, %v1872_v11 }
  0x9a   : > { %837 = vmatprep.mubr.bf16.mxu0 %v1687_v0  ;;  %950 = vmatprep.mubr.bf16.mxu1 %v1687_v0 }
  0xa1   : > { %1474 = vmatmul.mubr.msk.bf16.gmra.mxu0 %vm534_vm0, %v1584_v27  ;;  %1482 = vmatmul.mubr.msk.bf16.gmra.mxu1 %vm534_vm0, %v1584_v27 }
  0xa2   : > { %847 = vmatprep.mubr.bf16.mxu0 %v1687_v0  ;;  %960 = vmatprep.mubr.bf16.mxu1 %v1687_v0 }
  0xa9   : > { %1475 = vmatmul.mubr.msk.bf16.gmra.mxu0 %vm534_vm0, %v1585_v39  ;;  %1483 = vmatmul.mubr.msk.bf16.gmra.mxu1 %vm534_vm0, %v1585_v39 }
  0xaa   : > { %857 = vmatprep.mubr.bf16.mxu0 %v1687_v0  ;;  %970 = vmatprep.mubr.bf16.mxu1 %v1687_v0 }
  0xb1   : > { %1476 = vmatmul.mubr.msk.bf16.gmra.mxu0 %vm534_vm0, %v1586_v40  ;;  %1484 = vmatmul.mubr.msk.bf16.gmra.mxu1 %vm534_vm0, %v1586_v40 }
  0xb2   : > { %867 = vmatprep.mubr.bf16.mxu0 %v1687_v0  ;;  %980 = vmatprep.mubr.bf16.mxu1 %v1687_v0 }
  0xb9   : > { %1477 = vmatmul.mubr.msk.bf16.gmra.mxu0 %vm534_vm0, %v1587_v41  ;;  %1485 = vmatmul.mubr.msk.bf16.gmra.mxu1 %vm534_vm0, %v1587_v41 }
  0xba   : > { %877 = vmatprep.mubr.bf16.mxu0 %v1687_v0  ;;  %990 = vmatprep.mubr.bf16.mxu1 %v1687_v0 }
  0xbf   : > { %v1970_v5 = vpop.permute.xlu0 %1063 }
  0xc1   : > { %1478 = vmatmul.mubr.msk.bf16.gmra.mxu0 %vm534_vm0, %v1588_v42  ;;  %1486 = vmatmul.mubr.msk.bf16.gmra.mxu1 %vm534_vm0, %v1588_v42 }
  0xc2   : > { %887 = vmatprep.mubr.bf16.mxu0 %v1687_v0  ;;  %1000 = vmatprep.mubr.bf16.mxu1 %v1687_v0 }
  0xc3   : > { %v1974_v30 = vpop.permute.xlu0 %1068 }
  0xc9   : > { %1479 = vmatmul.mubr.msk.bf16.gmra.mxu0 %vm534_vm0, %v1589_v43  ;;  %1487 = vmatmul.mubr.msk.bf16.gmra.mxu1 %vm534_vm0, %v1589_v43 }
 0x111   : > { %v593_v44 = vpop.f32.mrf.mxu0  ;;  %v706_v45 = vpop.f32.mrf.mxu1 }
 0x113   : > { %v595_v46 = vpop.f32.mrf.mxu0  ;;  %v708_v47 = vpop.f32.mrf.mxu1 }
 0x115   : > { %v597_v48 = vpop.f32.mrf.mxu0  ;;  %v710_v49 = vpop.f32.mrf.mxu1 }
 0x117   : > { %v599_v50 = vpop.f32.mrf.mxu0  ;;  %v1968_v51 = vpop.f32.mrf.mxu1 }
 0x119   : > { %v603_v52 = vpop.f32.mrf.mxu0  ;;  %v716_v53 = vpop.f32.mrf.mxu1 }
 0x11a   : > { %v1011_v6 = vmax.f32 %v593_v44, %v603_v52  ;;  %v1013_v9 = vmax.f32 %v706_v45, %v716_v53 }
 0x11b   : > { %v605_v54 = vpop.f32.mrf.mxu0  ;;  %v718_v55 = vpop.f32.mrf.mxu1 }
 0x11c   : > { %v1012_v12 = vmax.f32 %v595_v46, %v605_v54  ;;  %v1014_v16 = vmax.f32 %v708_v47, %v718_v55 }
 0x11d   : > { %v607_v56 = vpop.f32.mrf.mxu0  ;;  %v720_v57 = vpop.f32.mrf.mxu1 }
 0x11e   : > { %v1019_v20 = vmax.f32 %v597_v48, %v607_v56  ;;  %v1021_v25 = vmax.f32 %v710_v49, %v720_v57 }
 0x11f   : > { %v609_v0 = vpop.f32.mrf.mxu0  ;;  %v722_v58 = vpop.f32.mrf.mxu1 }
 0x120   : > { %v1020_v31 = vmax.f32 %v599_v50, %v609_v0  ;;  %v1022_v36 = vmax.f32 %v1968_v51, %v722_v58 }
 0x121   : > { %v613_v59 = vpop.f32.mrf.mxu0  ;;  %v726_v60 = vpop.f32.mrf.mxu1 }
 0x123   : > { %v615_v61 = vpop.f32.mrf.mxu0  ;;  %v728_v62 = vpop.f32.mrf.mxu1 }
 0x125   : > { %v617_v63 = vpop.f32.mrf.mxu0  ;;  %v730_v1 = vpop.f32.mrf.mxu1 }
 0x127   : > { %v619_v2 = vpop.f32.mrf.mxu0  ;;  %v732_v3 = vpop.f32.mrf.mxu1 }
 0x129   : > { %v623_v4 = vpop.f32.mrf.mxu0  ;;  %v736_v8 = vpop.f32.mrf.mxu1 }
 0x12a   : > { %v1027_v7 = vmax.f32 %v613_v59, %v623_v4  ;;  %v1029_v10 = vmax.f32 %v726_v60, %v736_v8 }
 0x12b   : > { %v625_v11 = vpop.f32.mrf.mxu0  ;;  %v738_v15 = vpop.f32.mrf.mxu1 }
 0x12c   : > { %v1043_v13 = vmax.f32 %v1011_v6, %v1027_v7  ;;  %v1028_v14 = vmax.f32 %v615_v61, %v625_v11  ;;  %v1045_v17 = vmax.f32 %v1013_v9, %v1029_v10  ;;  %v1030_v18 = vmax.f32 %v728_v62, %v738_v15 }
 0x12d   : > { %v627_v19 = vpop.f32.mrf.mxu0  ;;  %v740_v24 = vpop.f32.mrf.mxu1 }
 0x12e   : > { %v1044_v21 = vmax.f32 %v1012_v12, %v1028_v14  ;;  %v1071_v22 = vadd.f32 %v1970_v5, %v1043_v13  ;;  %v1035_v23 = vmax.f32 %v617_v63, %v627_v19  ;;  %v1046_v26 = vmax.f32 %v1014_v16, %v1030_v18 }
 0x12f   : > { %v1073_v27 = vadd.f32 %v1970_v5, %v1045_v17  ;;  %v1037_v28 = vmax.f32 %v730_v1, %v740_v24  ;;  %v629_v29 = vpop.f32.mrf.mxu0  ;;  %v742_v35 = vpop.f32.mrf.mxu1 }
 0x130   : > { %v1072_v32 = vadd.f32 %v1970_v5, %v1044_v21  ;;  %v1051_v33 = vmax.f32 %v1019_v20, %v1035_v23  ;;  %v1036_v34 = vmax.f32 %v619_v2, %v629_v29  ;;  %v1074_v37 = vadd.f32 %v1970_v5, %v1046_v26  ;;  %v1992_v20 = vpop.permute.xlu1 %1211 }
 0x131   : > { %v1053_v38 = vmax.f32 %v1021_v25, %v1037_v28  ;;  %v1038_v39 = vmax.f32 %v732_v3, %v742_v35  ;;  %v633_v40 = vpop.f32.mrf.mxu0  ;;  %v1087_v41 = vmax.f32 %v1071_v22, 0.0  ;;  %v746_v45 = vpop.f32.mrf.mxu1  ;;  %v1089_v46 = vmax.f32 %v1073_v27, 0.0 }
 0x132   : > { %v1088_v42 = vmax.f32 %v1072_v32, 0.0  ;;  %v1052_v43 = vmax.f32 %v1020_v31, %v1036_v34  ;;  %v1079_v44 = vadd.f32 %v1974_v30, %v1051_v33  ;;  %v1090_v47 = vmax.f32 %v1074_v37, 0.0 }
 0x133   : > { %v1054_v48 = vmax.f32 %v1022_v36, %v1038_v39  ;;  %v1081_v49 = vadd.f32 %v1974_v30, %v1053_v38  ;;  %v635_v50 = vpop.f32.mrf.mxu0  ;;  %v748_v53 = vpop.f32.mrf.mxu1 }
 0x134   : > { %v1509_v52 = vpack.c.bf16 %v1088_v42, %v1087_v41  ;;  %v1080_v51 = vadd.f32 %v1974_v30, %v1052_v43  ;;  %v1510_v54 = vpack.c.bf16 %v1090_v47, %v1089_v46  ;;  %v1095_v57 = vmax.f32 %v1079_v44, 0.0  ;;  %v1996_v46 = vpop.permute.xlu1 %1216 }
 0x135   : > { %v1082_v55 = vadd.f32 %v1974_v30, %v1054_v48  ;;  %v637_v56 = vpop.f32.mrf.mxu0  ;;  %v750_v58 = vpop.f32.mrf.mxu1  ;;  %v1097_v59 = vmax.f32 %v1081_v49, 0.0 }
 0x136   : > { %1151 = vst [vmem:[%s1984_s7] sm:$0xff] %v1509_v52  ;;  %v1096_v0 = vmax.f32 %v1080_v51, 0.0  ;;  %1152 = vst [vmem:[%s1984_s7 + $0x8] sm:$0xff] %v1510_v54 }
 0x137   : > { %v1098_v60 = vmax.f32 %v1082_v55, 0.0  ;;  %v639_v61 = vpop.f32.mrf.mxu0  ;;  %v1988_v63 = vpop.f32.mrf.mxu1 }
 0x138   : > { %v1513_v62 = vpack.c.bf16 %v1096_v0, %v1095_v57 }
 0x139   : > { %v1514_v1 = vpack.c.bf16 %v1098_v60, %v1097_v59  ;;  %v643_v2 = vpop.f32.mrf.mxu0  ;;  %v756_v3 = vpop.f32.mrf.mxu1 }
 0x13a   : > { %1155 = vst [vmem:[%s1984_s7 + $0x40] sm:$0xff] %v1513_v62  ;;  %v1159_v21 = vmax.f32 %v633_v40, %v643_v2  ;;  %v1161_v24 = vmax.f32 %v746_v45, %v756_v3 }
 0x13b   : > { %1156 = vst [vmem:[%s1984_s7 + $0x48] sm:$0xff] %v1514_v1  ;;  %v645_v4 = vpop.f32.mrf.mxu0  ;;  %v758_v6 = vpop.f32.mrf.mxu1 }
 0x13c   : > { %v1160_v27 = vmax.f32 %v635_v50, %v645_v4  ;;  %v1162_v32 = vmax.f32 %v748_v53, %v758_v6 }
 0x13d   : > { %v647_v7 = vpop.f32.mrf.mxu0  ;;  %v760_v8 = vpop.f32.mrf.mxu1 }
 0x13e   : > { %v1167_v36 = vmax.f32 %v637_v56, %v647_v7  ;;  %v1169_v40 = vmax.f32 %v750_v58, %v760_v8 }
 0x13f   : > { %v649_v9 = vpop.f32.mrf.mxu0  ;;  %v762_v10 = vpop.f32.mrf.mxu1 }
 0x140   : > { %v1168_v47 = vmax.f32 %v639_v61, %v649_v9  ;;  %v1170_v51 = vmax.f32 %v1988_v63, %v762_v10 }
 0x141   : > { %v653_v11 = vpop.f32.mrf.mxu0  ;;  %v766_v12 = vpop.f32.mrf.mxu1 }
 0x143   : > { %v655_v13 = vpop.f32.mrf.mxu0  ;;  %v768_v14 = vpop.f32.mrf.mxu1 }
 0x145   : > { %v657_v15 = vpop.f32.mrf.mxu0  ;;  %v770_v16 = vpop.f32.mrf.mxu1 }
 0x147   : > { %v659_v17 = vpop.f32.mrf.mxu0  ;;  %v772_v18 = vpop.f32.mrf.mxu1 }
 0x149   : > { %v663_v19 = vpop.f32.mrf.mxu0  ;;  %v776_v23 = vpop.f32.mrf.mxu1 }
 0x14a   : > { %v1175_v22 = vmax.f32 %v653_v11, %v663_v19  ;;  %v1177_v25 = vmax.f32 %v766_v12, %v776_v23 }
 0x14b   : > { %v665_v26 = vpop.f32.mrf.mxu0  ;;  %v778_v31 = vpop.f32.mrf.mxu1 }
 0x14c   : > { %v1191_v28 = vmax.f32 %v1159_v21, %v1175_v22  ;;  %v1176_v29 = vmax.f32 %v655_v13, %v665_v26  ;;  %v1193_v33 = vmax.f32 %v1161_v24, %v1177_v25  ;;  %v1178_v34 = vmax.f32 %v768_v14, %v778_v31 }
 0x14d   : > { %v667_v35 = vpop.f32.mrf.mxu0  ;;  %v780_v41 = vpop.f32.mrf.mxu1 }
 0x14e   : > { %v1192_v37 = vmax.f32 %v1160_v27, %v1176_v29  ;;  %v1219_v38 = vadd.f32 %v1992_v20, %v1191_v28  ;;  %v1183_v39 = vmax.f32 %v657_v15, %v667_v35  ;;  %v1194_v42 = vmax.f32 %v1162_v32, %v1178_v34 }
 0x14f   : > { %v1221_v43 = vadd.f32 %v1992_v20, %v1193_v33  ;;  %v1185_v44 = vmax.f32 %v770_v16, %v780_v41  ;;  %v669_v45 = vpop.f32.mrf.mxu0  ;;  %v782_v52 = vpop.f32.mrf.mxu1 }
 0x150   : > { %v1220_v48 = vadd.f32 %v1992_v20, %v1192_v37  ;;  %v1199_v49 = vmax.f32 %v1167_v36, %v1183_v39  ;;  %v1184_v50 = vmax.f32 %v659_v17, %v669_v45  ;;  %v1222_v53 = vadd.f32 %v1992_v20, %v1194_v42 }
 0x151   : > { %v1201_v54 = vmax.f32 %v1169_v40, %v1185_v44  ;;  %v1186_v55 = vmax.f32 %v772_v18, %v782_v52  ;;  %v819_v56 = vpop.f32.mrf.mxu0  ;;  %v1235_v57 = vmax.f32 %v1219_v38, 0.0  ;;  %v932_v60 = vpop.f32.mrf.mxu1  ;;  %v1237_v61 = vmax.f32 %v1221_v43, 0.0 }
 0x152   : > { %v1236_v0 = vmax.f32 %v1220_v48, 0.0  ;;  %v1200_v58 = vmax.f32 %v1168_v47, %v1184_v50  ;;  %v1227_v59 = vadd.f32 %v1996_v46, %v1199_v49  ;;  %v1238_v62 = vmax.f32 %v1222_v53, 0.0 }
 0x153   : > { %v1202_v1 = vmax.f32 %v1170_v51, %v1186_v55  ;;  %v1229_v2 = vadd.f32 %v1996_v46, %v1201_v54  ;;  %v821_v3 = vpop.f32.mrf.mxu0  ;;  %v934_v6 = vpop.f32.mrf.mxu1 }
 0x154   : > { %v1517_v63 = vpack.c.bf16 %v1236_v0, %v1235_v57  ;;  %v1228_v4 = vadd.f32 %v1996_v46, %v1200_v58  ;;  %v1518_v7 = vpack.c.bf16 %v1238_v62, %v1237_v61  ;;  %v1243_v10 = vmax.f32 %v1227_v59, 0.0 }
 0x155   : > { %v1230_v8 = vadd.f32 %v1996_v46, %v1202_v1  ;;  %v823_v9 = vpop.f32.mrf.mxu0  ;;  %v936_v12 = vpop.f32.mrf.mxu1  ;;  %v1245_v13 = vmax.f32 %v1229_v2, 0.0 }
 0x156   : > { %1299 = vst [vmem:[%s1984_s7 + $0x20] sm:$0xff] %v1517_v63  ;;  %v1244_v11 = vmax.f32 %v1228_v4, 0.0  ;;  %1300 = vst [vmem:[%s1984_s7 + $0x28] sm:$0xff] %v1518_v7 }
 0x157   : > { %v1246_v14 = vmax.f32 %v1230_v8, 0.0  ;;  %v825_v15 = vpop.f32.mrf.mxu0  ;;  %v2007_v17 = vpop.f32.mrf.mxu1 }
 0x158   : > { %v1521_v16 = vpack.c.bf16 %v1244_v11, %v1243_v10 }
 0x159   : > { %v1522_v18 = vpack.c.bf16 %v1246_v14, %v1245_v13  ;;  %v829_v19 = vpop.f32.mrf.mxu0  ;;  %v942_v21 = vpop.f32.mrf.mxu1 }
 0x15a   : > { %1303 = vst [vmem:[%s1984_s7 + $0x60] sm:$0xff] %v1521_v16  ;;  %v1015_v38 = vmax.f32 %v819_v56, %v829_v19  ;;  %v1017_v40 = vmax.f32 %v932_v60, %v942_v21 }
 0x15b   : > { %1304 = vst [vmem:[%s1984_s7 + $0x68] sm:$0xff] %v1522_v18  ;;  %v831_v22 = vpop.f32.mrf.mxu0  ;;  %v944_v23 = vpop.f32.mrf.mxu1 }
 0x15c   : > { %v1016_v44 = vmax.f32 %v821_v3, %v831_v22  ;;  %v1018_v49 = vmax.f32 %v934_v6, %v944_v23 }
 0x15d   : > { %v833_v24 = vpop.f32.mrf.mxu0  ;;  %v946_v25 = vpop.f32.mrf.mxu1 }
 0x15e   : > { %v1023_v53 = vmax.f32 %v823_v9, %v833_v24  ;;  %v1025_v56 = vmax.f32 %v936_v12, %v946_v25 }
 0x15f   : > { %v835_v26 = vpop.f32.mrf.mxu0  ;;  %v948_v27 = vpop.f32.mrf.mxu1 }
 0x160   : > { %v1024_v62 = vmax.f32 %v825_v15, %v835_v26  ;;  %v1026_v4 = vmax.f32 %v2007_v17, %v948_v27 }
 0x161   : > { %v839_v28 = vpop.f32.mrf.mxu0  ;;  %v952_v29 = vpop.f32.mrf.mxu1 }
 0x163   : > { %v841_v31 = vpop.f32.mrf.mxu0  ;;  %v954_v32 = vpop.f32.mrf.mxu1 }
 0x165   : > { %v843_v33 = vpop.f32.mrf.mxu0  ;;  %v956_v34 = vpop.f32.mrf.mxu1 }
 0x167   : > { %v845_v35 = vpop.f32.mrf.mxu0  ;;  %v958_v36 = vpop.f32.mrf.mxu1 }
 0x169   : > { %v849_v37 = vpop.f32.mrf.mxu0  ;;  %v962_v41 = vpop.f32.mrf.mxu1 }
 0x16a   : > { %v1031_v39 = vmax.f32 %v839_v28, %v849_v37  ;;  %v1033_v42 = vmax.f32 %v952_v29, %v962_v41 }
 0x16b   : > { %v851_v43 = vpop.f32.mrf.mxu0  ;;  %v964_v48 = vpop.f32.mrf.mxu1 }
 0x16c   : > { %v1047_v45 = vmax.f32 %v1015_v38, %v1031_v39  ;;  %v1032_v47 = vmax.f32 %v841_v31, %v851_v43  ;;  %v1049_v50 = vmax.f32 %v1017_v40, %v1033_v42  ;;  %v1034_v52 = vmax.f32 %v954_v32, %v964_v48 }
 0x16d   : > { %v853_v51 = vpop.f32.mrf.mxu0  ;;  %v966_v0 = vpop.f32.mrf.mxu1 }
 0x16e   : > { %v1075_v54 = vadd.f32 %v1970_v5, %v1047_v45  ;;  %v1048_v55 = vmax.f32 %v1016_v44, %v1032_v47  ;;  %v1039_v57 = vmax.f32 %v843_v33, %v853_v51  ;;  %v1077_v58 = vadd.f32 %v1970_v5, %v1049_v50 }
 0x16f   : > { %v1050_v59 = vmax.f32 %v1018_v49, %v1034_v52  ;;  %v1041_v60 = vmax.f32 %v956_v34, %v966_v0  ;;  %v855_v61 = vpop.f32.mrf.mxu0  ;;  %v968_v63 = vpop.f32.mrf.mxu1 }
 0x170   : > { %v1076_v1 = vadd.f32 %v1970_v5, %v1048_v55  ;;  %v1055_v2 = vmax.f32 %v1023_v53, %v1039_v57  ;;  %v1040_v3 = vmax.f32 %v845_v35, %v855_v61  ;;  %v1042_v8 = vmax.f32 %v958_v36, %v968_v63 }
 0x171   : > { %v1078_v6 = vadd.f32 %v1970_v5, %v1050_v59  ;;  %v1057_v7 = vmax.f32 %v1025_v56, %v1041_v60  ;;  %v859_v9 = vpop.f32.mrf.mxu0  ;;  %v1091_v10 = vmax.f32 %v1075_v54, 0.0  ;;  %v972_v14 = vpop.f32.mrf.mxu1  ;;  %v1093_v15 = vmax.f32 %v1077_v58, 0.0 }
 0x172   : > { %v1092_v11 = vmax.f32 %v1076_v1, 0.0  ;;  %v1083_v12 = vadd.f32 %v1974_v30, %v1055_v2  ;;  %v1056_v13 = vmax.f32 %v1024_v62, %v1040_v3  ;;  %v1058_v19 = vmax.f32 %v1026_v4, %v1042_v8 }
 0x173   : > { %v1094_v16 = vmax.f32 %v1078_v6, 0.0  ;;  %v1085_v18 = vadd.f32 %v1974_v30, %v1057_v7  ;;  %v861_v21 = vpop.f32.mrf.mxu0  ;;  %v974_v22 = vpop.f32.mrf.mxu1 }
 0x174   : > { %v1511_v17 = vpack.c.bf16 %v1092_v11, %v1091_v10  ;;  %v1084_v5 = vadd.f32 %v1974_v30, %v1056_v13  ;;  %v1086_v24 = vadd.f32 %v1974_v30, %v1058_v19  ;;  %v1099_v26 = vmax.f32 %v1083_v12, 0.0 }
 0x175   : > { %v1512_v23 = vpack.c.bf16 %v1094_v16, %v1093_v15  ;;  %v863_v25 = vpop.f32.mrf.mxu0  ;;  %v976_v28 = vpop.f32.mrf.mxu1  ;;  %v1101_v29 = vmax.f32 %v1085_v18, 0.0 }
 0x176   : > { %1153 = vst [vmem:[%s1984_s7 + $0x10] sm:$0xff] %v1511_v17  ;;  %v1100_v27 = vmax.f32 %v1084_v5, 0.0  ;;  %v1102_v31 = vmax.f32 %v1086_v24, 0.0 }
 0x177   : > { %1154 = vst [vmem:[%s1984_s7 + $0x18] sm:$0xff] %v1512_v23  ;;  %v865_v32 = vpop.f32.mrf.mxu0  ;;  %v978_v34 = vpop.f32.mrf.mxu1 }
 0x178   : > { %v1515_v33 = vpack.c.bf16 %v1100_v27, %v1099_v26  ;;  %v1516_v35 = vpack.c.bf16 %v1102_v31, %v1101_v29 }
 0x179   : > { %v869_v36 = vpop.f32.mrf.mxu0  ;;  %v982_v37 = vpop.f32.mrf.mxu1 }
 0x17a   : > { %1157 = vst [vmem:[%s1984_s7 + $0x50] sm:$0xff] %v1515_v33  ;;  %1158 = vst [vmem:[%s1984_s7 + $0x58] sm:$0xff] %v1516_v35  ;;  %v1163_v53 = vmax.f32 %v859_v9, %v869_v36  ;;  %v1165_v57 = vmax.f32 %v972_v14, %v982_v37 }
 0x17b   : > { %v871_v38 = vpop.f32.mrf.mxu0  ;;  %v984_v39 = vpop.f32.mrf.mxu1 }
 0x17c   : > { %v1164_v58 = vmax.f32 %v861_v21, %v871_v38  ;;  %v1166_v62 = vmax.f32 %v974_v22, %v984_v39 }
 0x17d   : > { %v873_v30 = vpop.f32.mrf.mxu0  ;;  %v986_v41 = vpop.f32.mrf.mxu1 }
 0x17e   : > { %v1171_v63 = vmax.f32 %v863_v25, %v873_v30  ;;  %v1173_v9 = vmax.f32 %v976_v28, %v986_v41 }
 0x17f   : > { %v875_v40 = vpop.f32.mrf.mxu0  ;;  %v988_v42 = vpop.f32.mrf.mxu1 }
 0x180   : > { %v1172_v14 = vmax.f32 %v865_v32, %v875_v40  ;;  %v1174_v21 = vmax.f32 %v978_v34, %v988_v42 }
 0x181   : > { %v879_v43 = vpop.f32.mrf.mxu0  ;;  %v992_v44 = vpop.f32.mrf.mxu1 }
 0x183   : > { %v881_v45 = vpop.f32.mrf.mxu0  ;;  %v994_v47 = vpop.f32.mrf.mxu1 }
 0x185   : > { %v883_v48 = vpop.f32.mrf.mxu0  ;;  %v996_v49 = vpop.f32.mrf.mxu1 }
 0x187   : > { %v885_v50 = vpop.f32.mrf.mxu0  ;;  %v998_v52 = vpop.f32.mrf.mxu1 }
 0x189   : > { %v889_v51 = vpop.f32.mrf.mxu0  ;;  %v1002_v55 = vpop.f32.mrf.mxu1 }
 0x18a   : > { %v1179_v54 = vmax.f32 %v879_v43, %v889_v51  ;;  %v1181_v0 = vmax.f32 %v992_v44, %v1002_v55 }
 0x18b   : > { %v891_v56 = vpop.f32.mrf.mxu0  ;;  %v1004_v61 = vpop.f32.mrf.mxu1 }
 0x18c   : > { %v1195_v59 = vmax.f32 %v1163_v53, %v1179_v54  ;;  %v1180_v60 = vmax.f32 %v881_v45, %v891_v56  ;;  %v1197_v1 = vmax.f32 %v1165_v57, %v1181_v0  ;;  %v1182_v2 = vmax.f32 %v994_v47, %v1004_v61 }
 0x18d   : > { %v893_v3 = vpop.f32.mrf.mxu0  ;;  %v1006_v8 = vpop.f32.mrf.mxu1 }
 0x18e   : > { %v1223_v4 = vadd.f32 %v1992_v20, %v1195_v59  ;;  %v1196_v6 = vmax.f32 %v1164_v58, %v1180_v60  ;;  %v1187_v7 = vmax.f32 %v883_v48, %v893_v3  ;;  %v1225_v10 = vadd.f32 %v1992_v20, %v1197_v1 }
 0x18f   : > { %v1198_v11 = vmax.f32 %v1166_v62, %v1182_v2  ;;  %v1189_v12 = vmax.f32 %v996_v49, %v1006_v8  ;;  %v895_v13 = vpop.f32.mrf.mxu0  ;;  %v1008_v19 = vpop.f32.mrf.mxu1 }
 0x190   : > { %v1224_v15 = vadd.f32 %v1992_v20, %v1196_v6  ;;  %v1203_v16 = vmax.f32 %v1171_v63, %v1187_v7  ;;  %v1188_v18 = vmax.f32 %v885_v50, %v895_v13  ;;  %v1190_v22 = vmax.f32 %v998_v52, %v1008_v19 }
 0x191   : > { %v1226_v17 = vadd.f32 %v1992_v20, %v1198_v11  ;;  %v1205_v5 = vmax.f32 %v1173_v9, %v1189_v12  ;;  %v1239_v23 = vmax.f32 %v1223_v4, 0.0  ;;  %v1241_v27 = vmax.f32 %v1225_v10, 0.0 }
 0x192   : > { %v1240_v24 = vmax.f32 %v1224_v15, 0.0  ;;  %v1231_v25 = vadd.f32 %v1996_v46, %v1203_v16  ;;  %v1204_v26 = vmax.f32 %v1172_v14, %v1188_v18  ;;  %v1206_v31 = vmax.f32 %v1174_v21, %v1190_v22 }
 0x193   : > { %v1242_v28 = vmax.f32 %v1226_v17, 0.0  ;;  %v1233_v29 = vadd.f32 %v1996_v46, %v1205_v5 }
 0x194   : > { %v1519_v32 = vpack.c.bf16 %v1240_v24, %v1239_v23  ;;  %v1232_v33 = vadd.f32 %v1996_v46, %v1204_v26  ;;  %v1234_v34 = vadd.f32 %v1996_v46, %v1206_v31  ;;  %v1247_v35 = vmax.f32 %v1231_v25, 0.0 }
 0x195   : > { %v1520_v20 = vpack.c.bf16 %v1242_v28, %v1241_v27  ;;  %v1249_v37 = vmax.f32 %v1233_v29, 0.0 }
 0x196   : > { %1301 = vst [vmem:[%s1984_s7 + $0x30] sm:$0xff] %v1519_v32  ;;  %v1248_v36 = vmax.f32 %v1232_v33, 0.0  ;;  %v1250_v38 = vmax.f32 %v1234_v34, 0.0 }
 0x197   : > { %1302 = vst [vmem:[%s1984_s7 + $0x38] sm:$0xff] %v1520_v20 }
 0x198   : > { %v1523_v39 = vpack.c.bf16 %v1248_v36, %v1247_v35  ;;  %v1524_v46 = vpack.c.bf16 %v1250_v38, %v1249_v37 }
 0x19a   : > { %1305 = vst [vmem:[%s1984_s7 + $0x70] sm:$0xff] %v1523_v39  ;;  %1306 = vst [vmem:[%s1984_s7 + $0x78] sm:$0xff] %v1524_v46 }
 0x19b   : > { %1631 = shalt.err (!%p1628_p10)
}
 0x19c   : > { %s1632_s8 = scalar_lea.hbm %s2039_s25, 2048  ;;  %s1636_s22 = scalar_lea.hbm %s2089_s3, 4096 }
 0x19d   : > { %p1633_p0 = scmp.ne.s32.totalorder %s2039_s25, %s1632_s8  ;;  %p1637_p1 = scmp.lt.s32.totalorder %s2039_s25, %s2089_s3 }
 0x19e   : > { %p1638_p3 = scmp.lt.s32.totalorder %s1636_s22, %s1632_s8 }
 0x19f   : > { %p1634_p2 = pnand %p1633_p0, %p2097_p12 }
 0x1a0   : > { %p1639_p6 = por %p1638_p3, %p1637_p1 }
 0x1a1   : > { %p1635_p9 = pneg %p1634_p2 }
 0x1a3   : > { %p1640_p11 = pnand %p1639_p6, %p1635_p9 }
 0x1a5   : > { %1643 = shalt.err (!%p1640_p11)
}
 0x1a6   : > { %s1689_s6 = smov 1024   ;;  %s1690_s7 = smov 64  }
 0x1a7   : > { %1531 = dma.vmem_to_hbm [thread:$0]  (%p2097_p12), %s2041_s17, 2048, %s2039_s25, %s1308_s16, %s1689_s6, %s1689_s6, %s1690_s7  }
 0x1a8 PF: > { %s1336_s11 = sand.u32 1, %s1670_s12   ;;  %p2098_p13 = scmp.ne.s32.totalorder %s2094_s24, 0 }
 0x1a9   : > { %p2099_p4 = scmp.ge.s32.totalorder %s1682_s15, 2  ;;  %s1337_s19 = scalar_lea.sflag [#allocation4], %s1336_s11 }
 0x1ab   : > { %p1538_p5 = pnand %p2099_p4, %p2098_p13 }
 0x1ad   : > { %p1539_p7 = pneg %p1538_p5 }
 0x1af   : > { %1665 = dma.done.wait (%p1539_p7), %s1337_s19, 2048  }
 0x1b0   : > { %1667 = vsyncadd (%p1539_p7), %s1337_s19, 4294965248  ;;  %p16_p8 = scmp.ge.s32.totalorder %s1736_s18, 4   ;;  %s2100_s12 = smov %s1674_s13 }
 0x1b1   : > { %s2101_s13 = smov %s1678_s14  ;;  %s2102_s14 = smov %s1748_s21 }
 0x1b2   : > { %s2103_s15 = smov %s1736_s18  ;;  %18 = sbr.rel (!%p16_p8) target bundleno = 5 (0x5), region = 77 }
 0x1b7   :  { %1342 = vsyncpa [#allocation3], 1 }
 0x1b8   :  { %1344 = vsyncpa [#allocation3 + $0x1], 1 }
 0x1b9   :  { %1345 = vsyncpa [#allocation4], 1 }
 0x1ba   :  { %1347 = vsyncpa [#allocation4 + $0x1], 1 }

</bundles_post_ra>
